<compile_context>
chip_gen: v6e
topology: v6e:2x2x1
jax: 0.10.0
libtpu: 0.0.40
codegen_flags: <defaults>
</compile_context>

<pallas_src>
import jax
import jax.numpy as jnp
from jax.experimental import pallas as pl
from jax.experimental.pallas import tpu as pltpu

_THRESHOLD = 0.001  # forward() hard-codes threshold = 0.001

# Corner bit order (Lorensen & Cline):
#   b0=(0,0,0) b1=(1,0,0) b2=(1,1,0) b3=(0,1,0) b4=(0,0,1) b5=(1,0,1) b6=(1,1,1) b7=(0,1,1)


def _make_mc_kernel(R: int, TX: int):
    """Dense-MC kernel for one (TX, R*R) x-slab; lane axis = flattened (y, z)."""
    RR = R * R

    def shift_yz(v, delta):
        # out[x, f] = v[x, (f + delta) % RR]  (positive-shift form of a -delta roll).
        # Wrapped-in garbage only lands at y == R-1 (delta = R) or z == R-1
        # (delta = 1), which is masked by y_ok / z_ok below.
        return pltpu.roll(v, shift=RR - delta, axis=1)

    def kernel(lvl_ref, halo_ref, packed_ref, t_ref):
        thr = jnp.float32(_THRESHOLD)
        rm1 = jnp.float32(R - 1)

        lvl = lvl_ref[...]                                    # (TX, RR): level at (x, y, z)

        # ---- +x neighbor fetched in-kernel: rotate rows up by one and patch the
        #      slab's last row from the halo (first rows of the next slab).  No
        #      shifted input array, no wrapper-side concatenate. ----
        row = jax.lax.broadcasted_iota(jnp.int32, (TX, RR), 0)
        lvl_xp = pltpu.roll(lvl, shift=TX - 1, axis=0)        # row x <- row x+1 (wraps)
        lvl_xp = jnp.where(row == TX - 1, halo_ref[0:1, :], lvl_xp)

        # ---- coordinates / validity regenerated in-kernel (no coords input) ----
        xi = row + pl.program_id(0) * TX
        flat_i = jax.lax.broadcasted_iota(jnp.int32, (TX, RR), 1)
        flat_f = flat_i.astype(jnp.float32)
        # y = flat // R via float floor (exact for flat < 2^23, i.e. R <~ 1024 —
        # far beyond any dense R^3 grid that fits HBM), z = flat - y*R.
        yf = jnp.floor((flat_f + 0.5) * jnp.float32(1.0 / R))
        zf = flat_f - yf * jnp.float32(R)
        x_ok = xi < (R - 1)
        y_ok = flat_i < (RR - R)          # exact integer test for y < R-1
        z_ok = zf < rm1
        cell_valid = x_ok & y_ok & z_ok

        # ---- cube-corner occupancy via lane rolls ----
        lvl_y = shift_yz(lvl, R)          # (x, y+1, z); junk at y = R-1 (masked)
        lvl_z = shift_yz(lvl, 1)          # (x, y, z+1); junk at z = R-1 (masked)

        occ0 = lvl > thr                  # b0
        occ_x = lvl_xp > thr              # b1
        occ_y = lvl_y > thr               # b3
        occ_z = lvl_z > thr               # b4

        occ_xi = occ_x.astype(jnp.int32)
        occ_xy = shift_yz(occ_xi, R)      # b2 = occ at (x+1, y+1, z)
        g = occ_xi + 2 * occ_xy + 4 * occ_y.astype(jnp.int32)
        gz = shift_yz(g, 1)               # bit0=b5 (1,0,1)  bit1=b6 (1,1,1)  bit2=b7 (0,1,1)

        cube = (occ0.astype(jnp.int32)
                + 2 * occ_xi
                + 4 * occ_xy
                + 8 * occ_y.astype(jnp.int32)
                + 16 * occ_z.astype(jnp.int32)
                + 32 * (gz & 1)
                + 64 * ((gz >> 1) & 1)
                + 128 * ((gz >> 2) & 1))
        # Invalid boundary cells are forced to config 0 (aliases the legitimate
        # "all corners outside" config, which emits no triangles).
        packed = jnp.where(cell_valid, cube, 0)

        # ---- per-edge iso-crossings.  Only the interpolation parameter t is
        #      written (exact divide — the kernel is HBM-bound so VPU divides are
        #      free on the roofline); the crossing flag goes into bits 8..10 of
        #      the cube-index word.  Vertex positions are reconstructible
        #      downstream as (ijk + t*e_a) / (R-1); writing them dense was the
        #      dominant HBM cost in the previous version. ----
        nbr_val = (lvl_xp, lvl_y, lvl_z)
        nbr_occ = (occ_x, occ_y, occ_z)
        axis_ok = (x_ok, y_ok, z_ok)
        for a in range(3):
            cross = jnp.logical_and(occ0 != nbr_occ[a], axis_ok[a])
            denom = jnp.where(cross, nbr_val[a] - lvl, jnp.float32(1.0))
            t = (thr - lvl) / denom
            t = jnp.clip(t, 0.0, 1.0)                 # clamp degenerate edges
            t_ref[a, :, :] = jnp.where(cross, t, 0.0)
            packed = packed + cross.astype(jnp.int32) * (1 << (8 + a))
        packed_ref[...] = packed

    return kernel


def _vmem_capacity_bytes() -> int:
    try:
        return int(pltpu.get_tpu_info().vmem_capacity_bytes)
    except Exception:
        return 64 << 20      # conservative fallback: v7x per-TensorCore VMEM


def _choose_tile_x(R: int, vmem_cap: int):
    """Pick (tile_x, padded_R).

    Largest x-slab that fits a per-generation VMEM budget (double-buffered I/O +
    temporaries), preferring divisors of R (no padding) and keeping the grid at
    >= 4 steps so slab i-1's writeback overlaps slab i's read/compute."""
    RR = R * R
    budget = (vmem_cap * 3) // 4            # headroom for compiler scratch / semaphores
    # Per x-row: 1 input f32 plane + (1 int32 + 3 f32) output planes, double-buffered,
    # plus ~8 planes of in-flight temporaries.
    bytes_per_x = 4 * RR * ((1 + 4) * 2 + 8)
    max_tx = budget // bytes_per_x

    divisors = [t for t in range(8, R + 1, 8) if R % t == 0 and t <= max_tx]
    if divisors:
        for want_steps in (4, 2, 1):
            good = [t for t in divisors if (R + t - 1) // t >= want_steps]
            if good:
                return max(good), R
    if R <= max_tx:
        return R, R                          # whole axis as a single full-dim block
    # No 8-aligned divisor fits the budget: clamp to the largest multiple of 8 that
    # does and pad the x axis (padded rows are masked in-kernel and sliced off).
    tx = max(8, (max_tx // 8) * 8)
    # TODO(synk): for extreme R where even an 8-row slab overflows VMEM, a second
    # grid axis over the (y, z) lane dimension (with small roll halos) is needed.
    r_pad = ((R + tx - 1) // tx) * tx
    return tx, r_pad


class MarchingCubeHelper:
    """JAX/Pallas port of the dense compute in MarchingCubeHelper.forward.

    __call__ returns compact dense encodings (per-cube MC config with per-axis
    edge-crossing flags packed into bits 8..10, plus per-edge interpolation t);
    decode_dense() reconstructs dense vertex positions / masks in plain JAX.
    """

    def __init__(self, resolution, use_torch=True, tile_x=None, core_parallel=False):
        assert resolution >= 2
        self.resolution = resolution
        self.use_torch = use_torch        # kept for API parity; unused in JAX port
        self.points_range = (0.0, 1.0)
        self.verts = None

        self._vmem_cap = _vmem_capacity_bytes()
        if tile_x is None:
            tile_x, r_pad = _choose_tile_x(resolution, self._vmem_cap)
        else:
            assert tile_x % 8 == 0 or tile_x == resolution, \
                "tile_x must be a multiple of 8 (sublane alignment) or == resolution"
            r_pad = ((resolution + tile_x - 1) // tile_x) * tile_x
        self.tile_x = tile_x
        self._r_pad = r_pad
        self._halo = 8 if resolution >= 8 else r_pad
        # On v7x, pass core_parallel=True to split x-slabs across the two
        # TensorCores explicitly (ensure r_pad // tile_x is even for balance).
        self._core_parallel = core_parallel

        self._mc_call = self._build_pallas_call()
        self._forward = jax.jit(self._forward_impl)

    def _build_pallas_call(self):
        R, TX, RP, HALO = self.resolution, self.tile_x, self._r_pad, self._halo
        RR = R * R
        ngrid = RP // TX
        kernel = _make_mc_kernel(R, TX)

        halo_stride = max(TX // HALO, 1)

        def lvl_map(i):
            return (i, 0)

        def halo_map(i):
            # First HALO rows of the *next* slab (clamped for the last slab; its
            # patched row is x = R-1, which is always masked by x_ok).
            return (jnp.minimum(i + 1, ngrid - 1) * halo_stride, 0)

        out_shape = (
            jax.ShapeDtypeStruct((RP, RR), jnp.int32),       # MC config | crossing bits << 8
            jax.ShapeDtypeStruct((3, RP, RR), jnp.float32),  # edge interpolation t
        )
        in_specs = [
            pl.BlockSpec((TX, RR), lvl_map),                 # level slab
            pl.BlockSpec((HALO, RR), halo_map),              # +x halo (next slab's first rows)
        ]
        out_specs = (
            pl.BlockSpec((TX, RR), lambda i: (i, 0)),
            pl.BlockSpec((3, TX, RR), lambda i: (0, i, 0)),
        )

        # Per-step (single-buffer) kernel I/O bytes; pipeline double-buffers it.
        io_bytes = 4 * RR * (TX + HALO + TX + 3 * TX)
        vmem_limit = int(max(32 << 20,
                             min(self._vmem_cap - (8 << 20),
                                 2 * io_bytes + (12 << 20))))

        semantics = (pltpu.CORE_PARALLEL,) if self._core_parallel else ("parallel",)

        return pl.pallas_call(
            kernel,
            out_shape=out_shape,
            grid=(ngrid,),
            in_specs=in_specs,
            out_specs=out_specs,
            compiler_params=pltpu.CompilerParams(
                dimension_semantics=semantics,
                vmem_limit_bytes=vmem_limit),
        )

    def grid_vertices(self):
        # torch.linspace(0, 1, R) meshgrid('ij'), flattened to (R^3, 3).
        if self.verts is None:
            R = self.resolution
            ax = jnp.linspace(0.0, 1.0, R, dtype=jnp.float32)
            x, y, z = jnp.meshgrid(ax, ax, ax, indexing="ij")
            self.verts = jnp.stack(
                [x.reshape(-1), y.reshape(-1), z.reshape(-1)], axis=-1)
        return self.verts

    def _forward_impl(self, level):
        R, RP = self.resolution, self._r_pad
        RR = R * R
        lvl = jnp.asarray(level, jnp.float32).reshape(R, RR)
        if RP != R:
            lvl = jnp.pad(lvl, ((0, RP - R), (0, 0)))
        packed, edge_t = self._mc_call(lvl, lvl)   # same array feeds slab + halo specs
        if RP != R:
            packed = packed[:R]
            edge_t = edge_t[:, :R]
        # TODO(synk): the variable-length vertex/face extraction done by
        # torchmcubes.marching_cubes (256-entry triangle-table lookup + stream
        # compaction with data-dependent output sizes) has no fixed-shape Pallas
        # equivalent; we return compact dense encodings instead of (v_pos, t_pos_idx).
        return {
            "cube_index": packed.reshape(R, R, R),   # bits 0..7 config, 8..10 crossing flags
            "edge_t": edge_t.reshape(3, R, R, R),    # per-axis edge interpolation parameter
        }

    def decode_dense(self, out):
        """Plain-JAX reconstruction of the dense per-edge quantities (vertex
        positions already divided by resolution-1, crossing mask, raw config).
        Deliberately outside the Pallas hot path: writing these 13 extra f32
        planes from the kernel dominated HBM traffic in the previous version."""
        R = self.resolution
        packed = out["cube_index"]
        edge_t = out["edge_t"]
        config = packed & 0xFF
        mask = jnp.stack(
            [(packed >> (8 + a)) & 1 for a in range(3)]).astype(jnp.float32)
        ax = jnp.arange(R, dtype=jnp.float32)
        gx, gy, gz = jnp.meshgrid(ax, ax, ax, indexing="ij")
        base = jnp.stack([gx, gy, gz])                                 # (coord, R, R, R)
        eye = jnp.eye(3, dtype=jnp.float32)[:, :, None, None, None]    # (edge, coord, 1, 1, 1)
        v_pos = (base[None] + edge_t[:, None] * eye) / (R - 1.0)
        v_pos = v_pos * mask[:, None]   # non-crossing edges report (0,0,0); gate on mask
        return {"config": config, "v_pos_mask": mask, "v_pos": v_pos, "edge_t": edge_t}

    def __call__(self, level, threshold=0.0):
        del threshold  # forward() overwrites it with 0.001 (hard-coded in the kernel)
        return self._forward(level)


if __name__ == "__main__":
    RES = 16
    # Auto tiling picks TX=8 -> grid of 2 x-slabs, exercising the halo path.
    helper = MarchingCubeHelper(RES)

    key = jax.random.PRNGKey(0)
    level = jax.random.normal(key, (RES * RES * RES,), dtype=jnp.float32)

    out = helper(level)
    jax.block_until_ready(out)

    dense = helper.decode_dense(out)   # downstream (non-kernel) reconstruction demo
    jax.block_until_ready(dense)

    gv = helper.grid_vertices()
    jax.block_until_ready(gv)

    print("KERNEL_OK")
</pallas_src>

<mosaic_0001>
module attributes {stable_mosaic.version = 11 : i64} {
  func.func @kernel(%arg0: i32, %arg1: memref<8x256xf32, #tpu.memory_space<vmem>>, %arg2: memref<8x256xf32, #tpu.memory_space<vmem>>, %arg3: memref<8x256xi32, #tpu.memory_space<vmem>>, %arg4: memref<3x8x256xf32, #tpu.memory_space<vmem>>) attributes {dimension_semantics = [#tpu.dimension_semantics<parallel>], iteration_bounds = array<i64: 2>, scalar_prefetch = 0 : i64, scratch_operands = 0 : i64, tpu.core_type = #tpu.core_type<tc>, window_params = [{transform_indices = @transform_0, window_bounds = array<i64: 8, 256>}, {transform_indices = @transform_1, window_bounds = array<i64: 8, 256>}, {transform_indices = @transform_2, window_bounds = array<i64: 8, 256>}, {transform_indices = @transform_3, window_bounds = array<i64: 3, 8, 256>}]} {
    %c0 = arith.constant 0 : index
    %c0_0 = arith.constant 0 : index
    %0 = vector.load %arg1[%c0, %c0_0] : memref<8x256xf32, #tpu.memory_space<vmem>>, vector<8x256xf32>
    %1 = tpu.iota {dimensions = array<i32: 0>} : vector<8x256xi32>
    %c7_i32 = arith.constant 7 : i32
    %2 = tpu.dynamic_rotate %0 by %c7_i32 dim 0 : vector<8x256xf32>, i32 -> vector<8x256xf32>
    %c7_i32_1 = arith.constant 7 : i32
    %3 = vector.broadcast %c7_i32_1 : i32 to vector<8x256xi32>
    %4 = arith.cmpi eq, %1, %3 : vector<8x256xi32>
    %c0_2 = arith.constant 0 : index
    %c0_3 = arith.constant 0 : index
    %5 = vector.load %arg2[%c0_2, %c0_3] : memref<8x256xf32, #tpu.memory_space<vmem>>, vector<1x256xf32>
    %6 = vector.shape_cast %5 : vector<1x256xf32> to vector<1x256xf32>
    %7 = vector.broadcast %6 : vector<1x256xf32> to vector<8x256xf32>
    %8 = arith.select %4, %7, %2 : vector<8x256xi1>, vector<8x256xf32>
    %c8_i32 = arith.constant 8 : i32
    %9 = arith.muli %arg0, %c8_i32 : i32
    %10 = vector.broadcast %9 : i32 to vector<8x256xi32>
    %11 = arith.addi %1, %10 : vector<8x256xi32>
    %12 = tpu.iota {dimensions = array<i32: 1>} : vector<8x256xi32>
    %13 = arith.sitofp %12 : vector<8x256xi32> to vector<8x256xf32>
    %cst = arith.constant 5.000000e-01 : f32
    %14 = vector.broadcast %cst : f32 to vector<8x256xf32>
    %15 = arith.addf %13, %14 : vector<8x256xf32>
    %cst_4 = arith.constant 6.250000e-02 : f32
    %16 = vector.broadcast %cst_4 : f32 to vector<8x256xf32>
    %17 = arith.mulf %15, %16 : vector<8x256xf32>
    %18 = math.floor %17 : vector<8x256xf32>
    %cst_5 = arith.constant 1.600000e+01 : f32
    %19 = vector.broadcast %cst_5 : f32 to vector<8x256xf32>
    %20 = arith.mulf %18, %19 : vector<8x256xf32>
    %21 = arith.subf %13, %20 : vector<8x256xf32>
    %c15_i32 = arith.constant 15 : i32
    %22 = vector.broadcast %c15_i32 : i32 to vector<8x256xi32>
    %23 = arith.cmpi slt, %11, %22 : vector<8x256xi32>
    %c240_i32 = arith.constant 240 : i32
    %24 = vector.broadcast %c240_i32 : i32 to vector<8x256xi32>
    %25 = arith.cmpi slt, %12, %24 : vector<8x256xi32>
    %cst_6 = arith.constant 1.500000e+01 : f32
    %26 = vector.broadcast %cst_6 : f32 to vector<8x256xf32>
    %27 = arith.cmpf olt, %21, %26 : vector<8x256xf32>
    %28 = arith.andi %23, %25 : vector<8x256xi1>
    %29 = arith.andi %28, %27 : vector<8x256xi1>
    %c240_i32_7 = arith.constant 240 : i32
    %30 = tpu.dynamic_rotate %0 by %c240_i32_7 dim 1 : vector<8x256xf32>, i32 -> vector<8x256xf32>
    %c255_i32 = arith.constant 255 : i32
    %31 = tpu.dynamic_rotate %0 by %c255_i32 dim 1 : vector<8x256xf32>, i32 -> vector<8x256xf32>
    %cst_8 = arith.constant 1.000000e-03 : f32
    %32 = vector.broadcast %cst_8 : f32 to vector<8x256xf32>
    %33 = arith.cmpf ogt, %0, %32 : vector<8x256xf32>
    %cst_9 = arith.constant 1.000000e-03 : f32
    %34 = vector.broadcast %cst_9 : f32 to vector<8x256xf32>
    %35 = arith.cmpf ogt, %8, %34 : vector<8x256xf32>
    %cst_10 = arith.constant 1.000000e-03 : f32
    %36 = vector.broadcast %cst_10 : f32 to vector<8x256xf32>
    %37 = arith.cmpf ogt, %30, %36 : vector<8x256xf32>
    %cst_11 = arith.constant 1.000000e-03 : f32
    %38 = vector.broadcast %cst_11 : f32 to vector<8x256xf32>
    %39 = arith.cmpf ogt, %31, %38 : vector<8x256xf32>
    %40 = arith.extui %35 : vector<8x256xi1> to vector<8x256xi32>
    %c240_i32_12 = arith.constant 240 : i32
    %41 = tpu.dynamic_rotate %40 by %c240_i32_12 dim 1 : vector<8x256xi32>, i32 -> vector<8x256xi32>
    %c2_i32 = arith.constant 2 : i32
    %42 = vector.broadcast %c2_i32 : i32 to vector<8x256xi32>
    %43 = arith.muli %42, %41 : vector<8x256xi32>
    %44 = arith.addi %40, %43 : vector<8x256xi32>
    %45 = arith.extui %37 : vector<8x256xi1> to vector<8x256xi32>
    %c4_i32 = arith.constant 4 : i32
    %46 = vector.broadcast %c4_i32 : i32 to vector<8x256xi32>
    %47 = arith.muli %46, %45 : vector<8x256xi32>
    %48 = arith.addi %44, %47 : vector<8x256xi32>
    %c255_i32_13 = arith.constant 255 : i32
    %49 = tpu.dynamic_rotate %48 by %c255_i32_13 dim 1 : vector<8x256xi32>, i32 -> vector<8x256xi32>
    %50 = arith.extui %33 : vector<8x256xi1> to vector<8x256xi32>
    %c2_i32_14 = arith.constant 2 : i32
    %51 = vector.broadcast %c2_i32_14 : i32 to vector<8x256xi32>
    %52 = arith.muli %51, %40 : vector<8x256xi32>
    %53 = arith.addi %50, %52 : vector<8x256xi32>
    %c4_i32_15 = arith.constant 4 : i32
    %54 = vector.broadcast %c4_i32_15 : i32 to vector<8x256xi32>
    %55 = arith.muli %54, %41 : vector<8x256xi32>
    %56 = arith.addi %53, %55 : vector<8x256xi32>
    %57 = arith.extui %37 : vector<8x256xi1> to vector<8x256xi32>
    %c8_i32_16 = arith.constant 8 : i32
    %58 = vector.broadcast %c8_i32_16 : i32 to vector<8x256xi32>
    %59 = arith.muli %58, %57 : vector<8x256xi32>
    %60 = arith.addi %56, %59 : vector<8x256xi32>
    %61 = arith.extui %39 : vector<8x256xi1> to vector<8x256xi32>
    %c16_i32 = arith.constant 16 : i32
    %62 = vector.broadcast %c16_i32 : i32 to vector<8x256xi32>
    %63 = arith.muli %62, %61 : vector<8x256xi32>
    %64 = arith.addi %60, %63 : vector<8x256xi32>
    %c1_i32 = arith.constant 1 : i32
    %65 = vector.broadcast %c1_i32 : i32 to vector<8x256xi32>
    %66 = arith.andi %49, %65 : vector<8x256xi32>
    %c32_i32 = arith.constant 32 : i32
    %67 = vector.broadcast %c32_i32 : i32 to vector<8x256xi32>
    %68 = arith.muli %67, %66 : vector<8x256xi32>
    %69 = arith.addi %64, %68 : vector<8x256xi32>
    %c1_i32_17 = arith.constant 1 : i32
    %70 = vector.broadcast %c1_i32_17 : i32 to vector<8x256xi32>
    %71 = arith.shrsi %49, %70 : vector<8x256xi32>
    %c1_i32_18 = arith.constant 1 : i32
    %72 = vector.broadcast %c1_i32_18 : i32 to vector<8x256xi32>
    %73 = arith.andi %71, %72 : vector<8x256xi32>
    %c64_i32 = arith.constant 64 : i32
    %74 = vector.broadcast %c64_i32 : i32 to vector<8x256xi32>
    %75 = arith.muli %74, %73 : vector<8x256xi32>
    %76 = arith.addi %69, %75 : vector<8x256xi32>
    %c2_i32_19 = arith.constant 2 : i32
    %77 = vector.broadcast %c2_i32_19 : i32 to vector<8x256xi32>
    %78 = arith.shrsi %49, %77 : vector<8x256xi32>
    %c1_i32_20 = arith.constant 1 : i32
    %79 = vector.broadcast %c1_i32_20 : i32 to vector<8x256xi32>
    %80 = arith.andi %78, %79 : vector<8x256xi32>
    %c128_i32 = arith.constant 128 : i32
    %81 = vector.broadcast %c128_i32 : i32 to vector<8x256xi32>
    %82 = arith.muli %81, %80 : vector<8x256xi32>
    %83 = arith.addi %76, %82 : vector<8x256xi32>
    %c0_i32 = arith.constant 0 : i32
    %84 = vector.broadcast %c0_i32 : i32 to vector<8x256xi32>
    %85 = arith.select %29, %83, %84 : vector<8x256xi1>, vector<8x256xi32>
    %86 = arith.xori %33, %35 : vector<8x256xi1>
    %87 = arith.andi %86, %23 : vector<8x256xi1>
    %88 = arith.subf %8, %0 : vector<8x256xf32>
    %cst_21 = arith.constant 1.000000e+00 : f32
    %89 = vector.broadcast %cst_21 : f32 to vector<8x256xf32>
    %90 = arith.select %87, %88, %89 : vector<8x256xi1>, vector<8x256xf32>
    %cst_22 = arith.constant 1.000000e-03 : f32
    %91 = vector.broadcast %cst_22 : f32 to vector<8x256xf32>
    %92 = arith.subf %91, %0 : vector<8x256xf32>
    %93 = arith.divf %92, %90 : vector<8x256xf32>
    %cst_23 = arith.constant 0.000000e+00 : f32
    %cst_24 = arith.constant 1.000000e+00 : f32
    %94 = vector.broadcast %cst_23 : f32 to vector<8x256xf32>
    %95 = arith.maximumf %94, %93 : vector<8x256xf32>
    %96 = vector.broadcast %cst_24 : f32 to vector<8x256xf32>
    %97 = arith.minimumf %96, %95 : vector<8x256xf32>
    %cst_25 = arith.constant 0.000000e+00 : f32
    %98 = vector.broadcast %cst_25 : f32 to vector<8x256xf32>
    %99 = arith.select %87, %97, %98 : vector<8x256xi1>, vector<8x256xf32>
    %c0_26 = arith.constant 0 : index
    %c0_27 = arith.constant 0 : index
    %c0_28 = arith.constant 0 : index
    %100 = vector.load %arg4[%c0_26, %c0_27, %c0_28] : memref<3x8x256xf32, #tpu.memory_space<vmem>>, vector<1x8x256xf32>
    %101 = vector.shape_cast %100 : vector<1x8x256xf32> to vector<8x256xf32>
    %102 = vector.shape_cast %99 : vector<8x256xf32> to vector<1x8x256xf32>
    tpu.vector_store %arg4[%c0_26, %c0_27, %c0_28], %102 {strides = array<i32>} : memref<3x8x256xf32, #tpu.memory_space<vmem>>, vector<1x8x256xf32>,
    %103 = arith.extui %87 : vector<8x256xi1> to vector<8x256xi32>
    %c256_i32 = arith.constant 256 : i32
    %104 = vector.broadcast %c256_i32 : i32 to vector<8x256xi32>
    %105 = arith.muli %103, %104 : vector<8x256xi32>
    %106 = arith.addi %85, %105 : vector<8x256xi32>
    %107 = arith.xori %33, %37 : vector<8x256xi1>
    %108 = arith.andi %107, %25 : vector<8x256xi1>
    %109 = arith.subf %30, %0 : vector<8x256xf32>
    %cst_29 = arith.constant 1.000000e+00 : f32
    %110 = vector.broadcast %cst_29 : f32 to vector<8x256xf32>
    %111 = arith.select %108, %109, %110 : vector<8x256xi1>, vector<8x256xf32>
    %cst_30 = arith.constant 1.000000e-03 : f32
    %112 = vector.broadcast %cst_30 : f32 to vector<8x256xf32>
    %113 = arith.subf %112, %0 : vector<8x256xf32>
    %114 = arith.divf %113, %111 : vector<8x256xf32>
    %cst_31 = arith.constant 0.000000e+00 : f32
    %cst_32 = arith.constant 1.000000e+00 : f32
    %115 = vector.broadcast %cst_31 : f32 to vector<8x256xf32>
    %116 = arith.maximumf %115, %114 : vector<8x256xf32>
    %117 = vector.broadcast %cst_32 : f32 to vector<8x256xf32>
    %118 = arith.minimumf %117, %116 : vector<8x256xf32>
    %cst_33 = arith.constant 0.000000e+00 : f32
    %119 = vector.broadcast %cst_33 : f32 to vector<8x256xf32>
    %120 = arith.select %108, %118, %119 : vector<8x256xi1>, vector<8x256xf32>
    %c1 = arith.constant 1 : index
    %c0_34 = arith.constant 0 : index
    %c0_35 = arith.constant 0 : index
    %121 = vector.load %arg4[%c1, %c0_34, %c0_35] : memref<3x8x256xf32, #tpu.memory_space<vmem>>, vector<1x8x256xf32>
    %122 = vector.shape_cast %121 : vector<1x8x256xf32> to vector<8x256xf32>
    %123 = vector.shape_cast %120 : vector<8x256xf32> to vector<1x8x256xf32>
    tpu.vector_store %arg4[%c1, %c0_34, %c0_35], %123 {strides = array<i32>} : memref<3x8x256xf32, #tpu.memory_space<vmem>>, vector<1x8x256xf32>,
    %124 = arith.extui %108 : vector<8x256xi1> to vector<8x256xi32>
    %c512_i32 = arith.constant 512 : i32
    %125 = vector.broadcast %c512_i32 : i32 to vector<8x256xi32>
    %126 = arith.muli %124, %125 : vector<8x256xi32>
    %127 = arith.addi %106, %126 : vector<8x256xi32>
    %128 = arith.xori %33, %39 : vector<8x256xi1>
    %129 = arith.andi %128, %27 : vector<8x256xi1>
    %130 = arith.subf %31, %0 : vector<8x256xf32>
    %cst_36 = arith.constant 1.000000e+00 : f32
    %131 = vector.broadcast %cst_36 : f32 to vector<8x256xf32>
    %132 = arith.select %129, %130, %131 : vector<8x256xi1>, vector<8x256xf32>
    %cst_37 = arith.constant 1.000000e-03 : f32
    %133 = vector.broadcast %cst_37 : f32 to vector<8x256xf32>
    %134 = arith.subf %133, %0 : vector<8x256xf32>
    %135 = arith.divf %134, %132 : vector<8x256xf32>
    %cst_38 = arith.constant 0.000000e+00 : f32
    %cst_39 = arith.constant 1.000000e+00 : f32
    %136 = vector.broadcast %cst_38 : f32 to vector<8x256xf32>
    %137 = arith.maximumf %136, %135 : vector<8x256xf32>
    %138 = vector.broadcast %cst_39 : f32 to vector<8x256xf32>
    %139 = arith.minimumf %138, %137 : vector<8x256xf32>
    %cst_40 = arith.constant 0.000000e+00 : f32
    %140 = vector.broadcast %cst_40 : f32 to vector<8x256xf32>
    %141 = arith.select %129, %139, %140 : vector<8x256xi1>, vector<8x256xf32>
    %c2 = arith.constant 2 : index
    %c0_41 = arith.constant 0 : index
    %c0_42 = arith.constant 0 : index
    %142 = vector.load %arg4[%c2, %c0_41, %c0_42] : memref<3x8x256xf32, #tpu.memory_space<vmem>>, vector<1x8x256xf32>
    %143 = vector.shape_cast %142 : vector<1x8x256xf32> to vector<8x256xf32>
    %144 = vector.shape_cast %141 : vector<8x256xf32> to vector<1x8x256xf32>
    tpu.vector_store %arg4[%c2, %c0_41, %c0_42], %144 {strides = array<i32>} : memref<3x8x256xf32, #tpu.memory_space<vmem>>, vector<1x8x256xf32>,
    %145 = arith.extui %129 : vector<8x256xi1> to vector<8x256xi32>
    %c1024_i32 = arith.constant 1024 : i32
    %146 = vector.broadcast %c1024_i32 : i32 to vector<8x256xi32>
    %147 = arith.muli %145, %146 : vector<8x256xi32>
    %148 = arith.addi %127, %147 : vector<8x256xi32>
    %c0_43 = arith.constant 0 : index
    %c0_44 = arith.constant 0 : index
    %149 = vector.load %arg3[%c0_43, %c0_44] : memref<8x256xi32, #tpu.memory_space<vmem>>, vector<8x256xi32>
    tpu.vector_store %arg3[%c0_43, %c0_44], %148 {strides = array<i32>} : memref<8x256xi32, #tpu.memory_space<vmem>>, vector<8x256xi32>,
    return
  }
  func.func @transform_0(%arg0: i32) -> (i32, i32) {
    %c0_i32 = arith.constant 0 : i32
    %c0_i32_0 = arith.constant 0 : i32
    return %arg0, %c0_i32 : i32, i32
  }
  func.func @transform_1(%arg0: i32) -> (i32, i32) {
    %c1_i32 = arith.constant 1 : i32
    %0 = arith.addi %arg0, %c1_i32 : i32
    %c1_i32_0 = arith.constant 1 : i32
    %1 = arith.minsi %0, %c1_i32_0 : i32
    %c1_i32_1 = arith.constant 1 : i32
    %2 = arith.muli %1, %c1_i32_1 : i32
    %c0_i32 = arith.constant 0 : i32
    %c0_i32_2 = arith.constant 0 : i32
    return %2, %c0_i32 : i32, i32
  }
  func.func @transform_2(%arg0: i32) -> (i32, i32) {
    %c0_i32 = arith.constant 0 : i32
    %c0_i32_0 = arith.constant 0 : i32
    return %arg0, %c0_i32 : i32, i32
  }
  func.func @transform_3(%arg0: i32) -> (i32, i32, i32) {
    %c0_i32 = arith.constant 0 : i32
    %c0_i32_0 = arith.constant 0 : i32
    %c0_i32_1 = arith.constant 0 : i32
    return %c0_i32, %arg0, %c0_i32_0 : i32, i32, i32
  }
}

</mosaic_0001>

<bundles_post_ra>
// kernel: _forward_impl.1
= control target key start
LH: loop header
LB: loop body
LE: loop exit
PB: predicated region body
PF: predicated region fallthrough
CT: control target
= control target key end

     0   :  { %s687_s12 = smov 0   ;;  %s689_s13 = smov 0   ;;  %s980_s0 = inlined_call_operand.vmem [shape: f32[16,256], index: 0, kind: input, shape index: {}, may-alias: {0,1}]   ;;  %s981_s1 = inlined_call_operand.vmem [shape: f32[16,256], index: 1, kind: input, shape index: {}, may-alias: {0,1}]   ;;  %s982_s2 = inlined_call_operand.vmem [shape: s32[16,256], index: 2, kind: output, shape index: {0}]   ;;  %s983_s3 = inlined_call_operand.vmem [shape: f32[3,16,256], index: 3, kind: output, shape index: {1}]  }
   0x1   :  { %s691_s14 = smov 0  }
   0x2 LB: > { %s700_s15 = sadd.s32 4294967295, %s662_s14   ;;  %s702_s16 = sadd.s32 1, %s662_s14   ;;  %s662_s14 = sphi %s691_s14, %s1002_s14   ;;  %s658_s13 = sphi %s689_s13, %s1001_s13   ;;  %s654_s12 = sphi %s687_s12, %s1000_s12  }
   0x3   : > { %s102_s17 = ssub.s32 %s662_s14, %s702_s16  ;;  %s105_s18 = sadd.s32 1, %s658_s13 }
   0x4   : > { %p103_p0 = scmp.eq.s32.totalorder %s102_s17, 0  ;;  %p115_p1 = scmp.ne.s32.totalorder %s658_s13, %s654_s12 }
   0x5   : > { %p116_p2 = scmp.eq.s32.totalorder %s700_s15, 1  ;;  %p577_p3 = scmp.ge.s32.totalorder %s662_s14, 1 }
   0x6   : > { %s710_s19 = scalar_select %p103_p0, %s658_s13, %s105_s18  }
   0x7   : > { %p712_p4 = por %p116_p2, %p115_p1  ;;  %p162_p5 = scmp.lt.s32.totalorder %s662_s14, 3 }
   0x9   : > { %p163_p6 = pnand %p577_p3, %p162_p5 }
   0xa   : > { %p198_p7 = scmp.lt.s32.totalorder (!%p163_p6), %s700_s15, 1  ;;  %s203_s21 = sadd.s32 (!%p163_p6), 1, %s700_s15 }
   0xb   : > { %166 = sbr.rel (%p163_p6) target bundleno = 289 (0x121), region = 28  ;;  %p721_p8 = scmp.lt.s32.totalorder (!%p163_p6), %s203_s21, 1 }
   0xc   : > { %s587_s28 = sshll.u32 (!%p163_p6), %s700_s15, 3  ;;  %s664_s29 = smov (!%p163_p6), 112  }
   0xd   : > { %s665_s7 = smov (!%p163_p6), 127   ;;  %s195_s8 = sand.u32 (!%p163_p6), 1, %s654_s12  }
   0xe   : > { %s600_s9 = smul.u32 (!%p163_p6), 48, %s195_s8 }
  0x10   : > { %v221_v0 = vlaneseq  ;;  %s719_s22 = scalar_select %p198_p7, %s700_s15, 1  ;;  %v241_v4 = vstv %s587_s28  ;;  %v666_v16 = vmov 0  }
  0x11   : > { %s1004_s21 = smov (!%p721_p8, %s203_s21), 1  ;;  %s802_s10 = scalar_lea.vmem [#allocation2], %s600_s9 }
  0x12   : > { %s596_s24 = sshll.u32 %s719_s22, 4  ;;  %v222_v1 = vshrl.u32 %v221_v0, 7  ;;  %s1006_s21 = smov (!%p721_p8, %s1004_s21), 1  ;;  %v809_v36 = vand.u32 127, %v221_v0 }
  0x13   : > { %s202_s27 = scalar_lea.vmem %s980_s0, %s596_s24  ;;  %s597_s30 = sshll.u32 %s1006_s21, 4 }
  0x14   : > { %v733_v2 = vld [vmem:[%s202_s27] sm:$0xff]  ;;  %v739_v3 = vld [vmem:[%s202_s27 + $0x8] sm:$0xff]  ;;  %v230_v5 = vsub.s32 0, %v222_v1  ;;  %v234_v6 = vsub.s32 1, %v222_v1  ;;  %s210_s6 = scalar_lea.vmem %s981_s1, %s597_s30  ;;  %v749_v8 = vadd.s32 %v241_v4, %v222_v1  ;;  %vm225_vm0 = vcmp.eq.s32.totalorder %v222_v1, 7  ;;  %s218_s14 = scalar_lea.vmem %s982_s2, %s596_s24 }
  0x15   : > { %267 = vrot.lane.b32.xlu0 %v733_v2, %s664_s29  ;;  %v223_v7 = vrot.slane %v733_v2, 1  ;;  %v224_v9 = vrot.slane %v739_v3, 1  ;;  %v226_v10 = vld [vmem:[%s210_s6] ss:$8 sm:$0x3]  ;;  %v812_v37 = vadd.s32 128, %v809_v36  ;;  %v246_v38 = vcvt.s32.f32 %v809_v36 }
  0x16   : > { %v231_v11 = vrot.slane %v226_v10, %v230_v5  ;;  %v235_v12 = vrot.slane %v226_v10, %v234_v6  ;;  %vm258_vm1 = vcmp.lt.s32.totalorder %v749_v8, 15  ;;  %vm281_vm2 = vcmp.gt.f32.partialorder %v733_v2, 0.001  ;;  %s599_s17 = sshll.u32 (%p712_p4), %s700_s15, 4 }
  0x17   : > { %vm282_vm7 = vcmp.gt.f32.partialorder %v739_v3, 0.001  ;;  %v792_v24 = vsub.f32 0.001, %v733_v2  ;;  %v797_v27 = vsub.f32 0.001, %v739_v3  ;;  %v247_v39 = vcvt.s32.f32 %v812_v37  ;;  %s458_s22 = scalar_lea.vmem (%p712_p4), %s983_s3, %s599_s17 }
  0x18   : > { %v238_v13 = vsel %vm225_vm0, %v231_v11, %v223_v7  ;;  %v239_v14 = vsel %vm225_vm0, %v235_v12, %v224_v9  ;;  %v248_v40 = vadd.f32 0.5, %v246_v38  ;;  %vm271_vm10 = vcmp.lt.s32.totalorder %v809_v36, 112 }
  0x19   : > { %269 = vrot.lane.b32.xlu0 %v739_v3, %s664_s29  ;;  %vm283_vm3 = vcmp.gt.f32.partialorder %v238_v13, 0.001  ;;  %v361_v15 = vsub.f32 %v238_v13, %v733_v2  ;;  %vm284_vm4 = vcmp.gt.f32.partialorder %v239_v14, 0.001  ;;  %v362_v18 = vsub.f32 %v239_v14, %v739_v3 }
  0x1a   : > { %v758_v17 = vsel %vm283_vm3, 1, %v666_v16  ;;  %vm357_vm5 = vmxor %vm281_vm2, %vm283_vm3  ;;  %v775_v21 = vsel %vm284_vm4, 1, %v666_v16  ;;  %v249_v41 = vadd.f32 0.5, %v247_v39  ;;  %v250_v43 = vmul.f32 0.0625, %v248_v40 }
  0x1b   : > { %vm765_vm6 = vmand %vm357_vm5, %vm258_vm1  ;;  %291 = vrot.lane.b32.xlu1 %v758_v17, %s664_s29  ;;  %vm260_vm11 = vcmp.lt.s32.totalorder %v812_v37, 240  ;;  %v315_v58 = vmul.u32 2, %v758_v17  ;;  %v316_v59 = vmul.u32 2, %v775_v21  ;;  %v313_v61 = vsel %vm281_vm2, 1, %v666_v16 }
  0x1c   : > { %v363_v20 = vsel %vm765_vm6, %v361_v15, 1.0  ;;  %vm358_vm8 = vmxor %vm282_vm7, %vm284_vm4  ;;  %v251_v44 = vmul.f32 0.0625, %v249_v41  ;;  %v252_v48 = vfloor.f32 %v250_v43  ;;  %v314_v62 = vsel %vm282_vm7, 1, %v666_v16 }
  0x1d   : > { %274 = vrot.lane.b32.xlu0 %v733_v2, %s665_s7  ;;  %628 = vrcp.f32 %v363_v20  ;;  %vm781_vm9 = vmand %vm358_vm8, %vm258_vm1  ;;  %v317_v5 = vadd.s32 %v315_v58, %v313_v61  ;;  %v318_v6 = vadd.s32 %v316_v59, %v314_v62  ;;  %vm278_vm3 = vcmp.lt.s32.totalorder %v809_v36, 127 }
  0x1e   : > { %v364_v23 = vsel %vm781_vm9, %v362_v18, 1.0  ;;  %v253_v49 = vfloor.f32 %v251_v44  ;;  %v254_v56 = vmul.f32 16.0, %v252_v48 }
  0x1f   : > { %630 = vrcp.f32 %v364_v23  ;;  %293 = vrot.lane.b32.xlu1 %v775_v21, %s664_s29 }
  0x20   : > { %v255_v57 = vmul.f32 16.0, %v253_v49  ;;  %v856_v1 = vsub.f32 %v246_v38, %v254_v56 }
  0x22   : > { %v858_v4 = vsub.f32 %v247_v39, %v255_v57  ;;  %vm261_vm4 = vcmp.lt.f32.partialorder %v856_v1, 15.0 }
  0x23   : > { %276 = vrot.lane.b32.xlu1 %v739_v3, %s665_s7 }
  0x24   : > { %vm262_vm5 = vcmp.lt.f32.partialorder %v858_v4, 15.0 }
  0x2a   : > { %v629_v25 = vpop.eup %628 }
  0x2b   : > { %v368_v26 = vmul.f32 %v629_v25, %v792_v24 }
  0x2c   : > { %v631_v28 = vpop.eup %630 }
  0x2d   : > { %v371_v29 = vmax.f32 %v368_v26, 0.0  ;;  %v370_v30 = vmul.f32 %v631_v28, %v797_v27 }
  0x2f   : > { %v373_v31 = vmin.f32 %v371_v29, 1.0  ;;  %v372_v32 = vmax.f32 %v370_v30, 0.0 }
  0x31   : > { %v375_v33 = vsel %vm765_vm6, %v373_v31, 0.0  ;;  %v374_v34 = vmin.f32 %v372_v32, 1.0 }
  0x32   : > { %377 = vst [vmem:[%s802_s10] sm:$0xff] %v375_v33 }
  0x33   : > { %v376_v35 = vsel %vm781_vm9, %v374_v34, 0.0 }
  0x34   : > { %378 = vst [vmem:[%s802_s10 + $0x8] sm:$0xff] %v376_v35 }
  0x87   : > { %v268_v42 = vpop.permute.xlu0 %267 }
  0x8b   : > { %v270_v45 = vpop.permute.xlu0 %269 }
  0x8c   : > { %v272_v46 = vsel %vm271_vm10, %v268_v42, %v270_v45  ;;  %v273_v47 = vsel %vm271_vm10, %v270_v45, %v268_v42 }
  0x8d   : > { %vm285_vm12 = vcmp.gt.f32.partialorder %v272_v46, 0.001  ;;  %vm286_vm13 = vcmp.gt.f32.partialorder %v273_v47, 0.001  ;;  %v389_v50 = vsub.f32 %v272_v46, %v733_v2  ;;  %v390_v51 = vsub.f32 %v273_v47, %v739_v3  ;;  %v292_v60 = vpop.permute.xlu1 %291 }
  0x8e   : > { %vm827_vm14 = vmxor %vm281_vm2, %vm285_vm12  ;;  %v301_v63 = vsel %vm285_vm12, 1, %v666_v16  ;;  %v302_v0 = vsel %vm286_vm13, 1, %v666_v16 }
  0x8f   : > { %vm386_vm15 = vmxor %vm282_vm7, %vm286_vm13  ;;  %v391_v53 = vsel %vm827_vm14, %v389_v50, 1.0  ;;  %v303_v9 = vmul.u32 4, %v301_v63  ;;  %v304_v10 = vmul.u32 4, %v302_v0  ;;  %v275_v15 = vpop.permute.xlu0 %274 }
  0x90   : > { %vm838_vm0 = vmand %vm386_vm15, %vm260_vm11  ;;  %632 = vrcp.f32 %v391_v53  ;;  %v323_v23 = vmul.u32 8, %v301_v63  ;;  %v324_v25 = vmul.u32 8, %v302_v0 }
  0x91   : > { %v392_v55 = vsel %vm838_vm0, %v390_v51, 1.0  ;;  %v294_v7 = vpop.permute.xlu1 %293  ;;  %v407_v8 = vsel %vm838_vm0, 1, %v666_v16 }
  0x92   : > { %634 = vrcp.f32 %v392_v55  ;;  %v295_v11 = vsel %vm271_vm10, %v292_v60, %v294_v7  ;;  %v296_v12 = vsel %vm271_vm10, %v294_v7, %v292_v60 }
  0x93   : > { %v297_v13 = vmul.u32 2, %v295_v11  ;;  %v298_v14 = vmul.u32 2, %v296_v12 }
  0x94   : > { %v319_v18 = vmul.u32 4, %v295_v11  ;;  %v320_v20 = vmul.u32 4, %v296_v12 }
  0x95   : > { %v299_v26 = vadd.s32 %v297_v13, %v758_v17  ;;  %v300_v28 = vadd.s32 %v298_v14, %v775_v21  ;;  %v277_v29 = vpop.permute.xlu1 %276 }
  0x96   : > { %v321_v30 = vadd.s32 %v319_v18, %v317_v5  ;;  %v322_v31 = vadd.s32 %v320_v20, %v318_v6  ;;  %v279_v32 = vsel %vm278_vm3, %v275_v15, %v277_v29  ;;  %v280_v33 = vsel %vm278_vm3, %v277_v29, %v275_v15 }
  0x97   : > { %vm287_vm8 = vcmp.gt.f32.partialorder %v279_v32, 0.001  ;;  %vm288_vm10 = vcmp.gt.f32.partialorder %v280_v33, 0.001  ;;  %v416_v34 = vsub.f32 %v279_v32, %v733_v2  ;;  %v417_v35 = vsub.f32 %v280_v33, %v739_v3 }
  0x98   : > { %v325_v39 = vadd.s32 %v323_v23, %v321_v30  ;;  %v326_v17 = vadd.s32 %v324_v25, %v322_v31  ;;  %v327_v21 = vsel %vm287_vm8, 1, %v666_v16  ;;  %v328_v40 = vsel %vm288_vm10, 1, %v666_v16  ;;  %vm412_vm12 = vmxor %vm281_vm2, %vm287_vm8 }
  0x99   : > { %v329_v42 = vmul.u32 16, %v327_v21  ;;  %v330_v43 = vmul.u32 16, %v328_v40  ;;  %vm413_vm13 = vmxor %vm282_vm7, %vm288_vm10  ;;  %v306_v44 = vadd.s32 %v304_v10, %v300_v28  ;;  %v305_v47 = vadd.s32 %v303_v9, %v299_v26 }
  0x9a   : > { %vm884_vm15 = vmand %vm412_vm12, %vm261_vm4  ;;  %v379_v30 = vsel %vm765_vm6, 1, %v666_v16  ;;  %v380_v31 = vsel %vm781_vm9, 1, %v666_v16 }
  0x9b   : > { %v331_v49 = vadd.s32 %v329_v42, %v325_v39  ;;  %v332_v50 = vadd.s32 %v330_v43, %v326_v17  ;;  %vm891_vm2 = vmand %vm413_vm13, %vm262_vm5  ;;  %309 = vrot.lane.b32.xlu1 %v306_v44, %s665_s7  ;;  %v418_v51 = vsel %vm884_vm15, %v416_v34, 1.0  ;;  %307 = vrot.lane.b32.xlu0 %v305_v47, %s665_s7  ;;  %v381_v37 = vmul.u32 256, %v379_v30 }
  0x9c   : > { %v419_v53 = vsel %vm891_vm2, %v417_v35, 1.0  ;;  %636 = vrcp.f32 %v418_v51  ;;  %vm264_vm7 = vmand %vm258_vm1, %vm260_vm11  ;;  %v382_v40 = vmul.u32 256, %v380_v31  ;;  %v433_v43 = vsel %vm884_vm15, 1, %v666_v16 }
  0x9d   : > { %v633_v38 = vpop.eup %632  ;;  %638 = vrcp.f32 %v419_v53  ;;  %vm933_vm6 = vmand %vm258_vm1, %vm261_vm4  ;;  %v434_v4 = vsel %vm891_vm2, 1, %v666_v16  ;;  %v409_v47 = vmul.u32 512, %v407_v8  ;;  %v473_v53 = vld [vmem:[%s802_s10 + $0x8] sm:$0xff] (%p712_p4) }
  0x9e   : > { %v394_v41 = vmul.f32 %v633_v38, %v792_v24  ;;  %vm266_vm9 = vmand %vm264_vm7, %vm262_vm5  ;;  %474 = vst [vmem:[%s458_s22 + $0x8] sm:$0xff] (%p712_p4), %v473_v53 }
  0x9f   : > { %v635_v45 = vpop.eup %634 }
  0xa0   : > { %v396_v2 = vmul.f32 %v635_v45, %v797_v27  ;;  %v397_v48 = vmax.f32 %v394_v41, 0.0  ;;  %v406_v41 = vsel %vm827_vm14, 1, %v666_v16  ;;  %v471_v16 = vld [vmem:[%s802_s10] sm:$0xff] (%p712_p4) }
  0xa1   : > { %v408_v45 = vmul.u32 512, %v406_v41  ;;  %472 = vst [vmem:[%s458_s22] sm:$0xff] (%p712_p4), %v471_v16 }
  0xa2   : > { %v398_v55 = vmax.f32 %v396_v2, 0.0  ;;  %v399_v56 = vmin.f32 %v397_v48, 1.0  ;;  %v435_v48 = vmul.u32 1024, %v433_v43 }
  0xa4   : > { %v400_v57 = vmin.f32 %v398_v55, 1.0  ;;  %v401_v58 = vsel %vm827_vm14, %v399_v56, 0.0 }
  0xa5   : > { %588 = vst [vmem:[%s802_s10 + $0x10] sm:$0xff] %v401_v58 }
  0xa6   : > { %v402_v59 = vsel %vm838_vm0, %v400_v57, 0.0 }
  0xa7   : > { %589 = vst [vmem:[%s802_s10 + $0x18] sm:$0xff] %v402_v59 }
  0xa9   : > { %v637_v60 = vpop.eup %636 }
  0xaa   : > { %v639_v61 = vpop.eup %638  ;;  %v421_v62 = vmul.f32 %v637_v60, %v792_v24 }
  0xab   : > { %v423_v63 = vmul.f32 %v639_v61, %v797_v27 }
  0xac   : > { %v424_v0 = vmax.f32 %v421_v62, 0.0  ;;  %v475_v55 = vld [vmem:[%s802_s10 + $0x10] sm:$0xff] (%p712_p4) }
  0xad   : > { %v425_v5 = vmax.f32 %v423_v63, 0.0  ;;  %476 = vst [vmem:[%s458_s22 + $0x20] sm:$0xff] (%p712_p4), %v475_v55 }
  0xae   : > { %v426_v6 = vmin.f32 %v424_v0, 1.0  ;;  %v477_v56 = vld [vmem:[%s802_s10 + $0x18] sm:$0xff] (%p712_p4) }
  0xaf   : > { %v427_v7 = vmin.f32 %v425_v5, 1.0  ;;  %478 = vst [vmem:[%s458_s22 + $0x28] sm:$0xff] (%p712_p4), %v477_v56 }
  0xb0   : > { %v428_v9 = vsel %vm884_vm15, %v426_v6, 0.0 }
  0xb1   : > { %v429_v10 = vsel %vm891_vm2, %v427_v7, 0.0  ;;  %590 = vst [vmem:[%s802_s10 + $0x20] sm:$0xff] %v428_v9 }
  0xb2   : > { %591 = vst [vmem:[%s802_s10 + $0x28] sm:$0xff] %v429_v10 }
  0xb8   : > { %v479_v57 = vld [vmem:[%s802_s10 + $0x20] sm:$0xff] (%p712_p4) }
  0xb9   : > { %v481_v58 = vld [vmem:[%s802_s10 + $0x28] sm:$0xff] (%p712_p4)  ;;  %480 = vst [vmem:[%s458_s22 + $0x40] sm:$0xff] (%p712_p4), %v479_v57 }
  0xba   : > { %482 = vst [vmem:[%s458_s22 + $0x48] sm:$0xff] (%p712_p4), %v481_v58 }
 0x10d   : > { %v310_v11 = vpop.permute.xlu1 %309  ;;  %v308_v12 = vpop.permute.xlu0 %307 }
 0x10e   : > { %v311_v13 = vsel %vm278_vm3, %v308_v12, %v310_v11  ;;  %v312_v24 = vsel %vm278_vm3, %v310_v11, %v308_v12 }
 0x10f   : > { %v333_v27 = vand.u32 1, %v311_v13  ;;  %v334_v14 = vand.u32 1, %v312_v24  ;;  %v339_v15 = vshra.s32 %v311_v13, 1  ;;  %v340_v18 = vshra.s32 %v312_v24, 1 }
 0x110   : > { %v347_v20 = vshra.s32 %v311_v13, 2  ;;  %v348_v23 = vshra.s32 %v312_v24, 2 }
 0x111   : > { %v335_v25 = vmul.u32 32, %v333_v27  ;;  %v336_v26 = vmul.u32 32, %v334_v14  ;;  %v341_v28 = vand.u32 1, %v339_v15  ;;  %v342_v29 = vand.u32 1, %v340_v18 }
 0x112   : > { %v349_v36 = vand.u32 1, %v347_v20  ;;  %v350_v32 = vand.u32 1, %v348_v23 }
 0x113   : > { %v337_v33 = vadd.s32 %v335_v25, %v331_v49  ;;  %v338_v34 = vadd.s32 %v336_v26, %v332_v50  ;;  %v343_v35 = vmul.u32 64, %v341_v28  ;;  %v344_v38 = vmul.u32 64, %v342_v29 }
 0x114   : > { %v351_v17 = vmul.u32 128, %v349_v36  ;;  %v352_v21 = vmul.u32 128, %v350_v32 }
 0x115   : > { %v345_v22 = vadd.s32 %v343_v35, %v337_v33  ;;  %v346_v39 = vadd.s32 %v344_v38, %v338_v34  ;;  %v436_v49 = vmul.u32 1024, %v434_v4 }
 0x117   : > { %v353_v1 = vadd.s32 %v351_v17, %v345_v22  ;;  %v354_v42 = vadd.s32 %v352_v21, %v346_v39 }
 0x119   : > { %v355_v44 = vsel %vm933_vm6, %v353_v1, 0  ;;  %v356_v52 = vsel %vm266_vm9, %v354_v42, 0 }
 0x11a   : > { %v383_v2 = vadd.s32 %v381_v37, %v355_v44  ;;  %v384_v54 = vadd.s32 %v382_v40, %v356_v52 }
 0x11c   : > { %v410_v50 = vadd.s32 %v408_v45, %v383_v2  ;;  %v411_v51 = vadd.s32 %v409_v47, %v384_v54  ;;  %455 = sbr.rel (!%p712_p4) target bundleno = 289 (0x121), region = 36 }
 0x11e   : > { %v437_v46 = vadd.s32 %v435_v48, %v410_v50  ;;  %v438_v3 = vadd.s32 %v436_v49, %v411_v51 }
 0x120   : > { %439 = vst [vmem:[%s218_s14] sm:$0xff] %v437_v46  ;;  %440 = vst [vmem:[%s218_s14 + $0x8] sm:$0xff] %v438_v3 }
 0x121 PF: > { %p11_p9 = scmp.ge.s32.totalorder %s702_s16, 4   ;;  %s1000_s12 = smov %s658_s13 }
 0x122   : > { %s1001_s13 = smov %s710_s19  ;;  %s1002_s14 = smov %s702_s16 }
 0x123   :  { %13 = sbr.rel (!%p11_p9) target bundleno = 2 (0x2), region = 98 }

</bundles_post_ra>
